<compile_context>
chip_gen: v7x
topology: tpu7x:2x2x1
jax: 0.10.0
libtpu: 0.0.40
codegen_flags: <defaults>
</compile_context>

<pallas_src>
import jax
import jax.numpy as jnp
from jax.experimental import pallas as pl
from jax.experimental.pallas import tpu as pltpu


def _round_up(x, m):
    return -(-x // m) * m


def _default_num_row_chunks():
    """2 on chips with two TensorCores (v4 / v5p megacore, v7x), else 1."""
    try:
        kind = jax.devices()[0].device_kind.lower()
    except Exception:
        return 1
    if ("v7" in kind) or ("v4" in kind) or ("v5p" in kind):
        return 2
    return 1


def _pick_tile_rows(n_rows, d, itemsize, tile_rows=None):
    """Rows per grid step: big (HBM-roofline) but VMEM- and dtype-safe."""
    if tile_rows is None:
        # 3 input streams x 2 pipeline buffers, ~36 MiB total budget so the
        # same tiling fits v7x's 64 MiB-per-TC VMEM with headroom.
        budget = 36 * 1024 * 1024
        tile_rows = min(8192, budget // (3 * 2 * d * itemsize))
    tile_rows = int(tile_rows)
    # Never taller than the data (only the *last* block is ragged).
    cap = max(32, (n_rows // 32) * 32)
    tile_rows = max(32, min(tile_rows, cap))
    if tile_rows > 512:
        tile_rows = (tile_rows // 512) * 512   # in-kernel 512-row chunk divides tn
    else:
        tile_rows = (tile_rows // 32) * 32     # sublane-safe for every dtype
    return tile_rows


def _make_partial_kernel(n_rows, chunk_rows, need_mask):
    """Kernel accumulating per-lane sums of (s-t)^2 - (s-f)^2 into (8, D)."""

    def kernel(src_ref, tgt_ref, far_ref, out_ref):
        ti = pl.program_id(1)

        @pl.when(ti == 0)
        def _init():
            out_ref[...] = jnp.zeros_like(out_ref)

        tn, d = src_ref.shape
        n_chunks = tn // chunk_rows
        # Row offset of this block in the *unclamped* row space; blocks that
        # were clamped by the index_map (fully out of bounds) mask to zero.
        block_id = pl.program_id(0) * pl.num_programs(1) + ti
        row0 = block_id * tn

        def body(c, acc):
            off = c * chunk_rows
            if not isinstance(off, int):
                off = pl.multiple_of(off, chunk_rows)
            s = src_ref[pl.ds(off, chunk_rows), :].astype(jnp.float32)
            t = tgt_ref[pl.ds(off, chunk_rows), :].astype(jnp.float32)
            f = far_ref[pl.ds(off, chunk_rows), :].astype(jnp.float32)
            # Fused difference of squares: (s-t)^2 - (s-f)^2 == (t-f)*(t+f-2s).
            diff = (t - f) * (t + f - 2.0 * s)
            if need_mask:
                rows = row0 + off + jax.lax.broadcasted_iota(
                    jnp.int32, (chunk_rows, d), 0)
                diff = jnp.where(rows < n_rows, diff, 0.0)
            # Fold the chunk into 8 sublanes (VPU-only); the cross-sublane
            # reduce is deferred to the O(D) epilogue outside the kernel.
            return acc + diff.reshape(chunk_rows // 8, 8, d).sum(axis=0)

        acc = jax.lax.fori_loop(
            0, n_chunks, body, jnp.zeros((8, d), jnp.float32),
            unroll=True if n_chunks <= 4 else 4)
        out_ref[...] += acc

    return kernel


def triplet_loss(src_cdf, tgt_cdf, far_cdf, margin=0.2,
                 tile_rows=None, num_row_chunks=None):
    assert src_cdf.shape == tgt_cdf.shape == far_cdf.shape
    assert src_cdf.ndim == 2
    n, d = src_cdf.shape
    itemsize = jnp.dtype(src_cdf.dtype).itemsize

    # Degenerate tiny-N case: pad up to one 32-row block (negligible cost).
    if n < 32:
        pad = ((0, 32 - n), (0, 0))
        src_cdf = jnp.pad(src_cdf, pad)
        tgt_cdf = jnp.pad(tgt_cdf, pad)
        far_cdf = jnp.pad(far_cdf, pad)
    n_arr = src_cdf.shape[0]

    tn = _pick_tile_rows(n_arr, d, itemsize, tile_rows)
    chunk_rows = min(tn, 512)
    assert tn % chunk_rows == 0 and chunk_rows % 8 == 0

    tiles_total = pl.cdiv(n_arr, tn)
    g = _default_num_row_chunks() if num_row_chunks is None else int(num_row_chunks)
    g = max(1, min(g, tiles_total))
    tiles_per_chunk = pl.cdiv(tiles_total, g)
    # Mask needed whenever the grid covers more rows than the true N.
    need_mask = (g * tiles_per_chunk * tn != n)

    last_block = tiles_total - 1

    def in_map(gi, ti):
        b = gi * tiles_per_chunk + ti
        # Clamp fully-out-of-bounds blocks (only when g doesn't divide the
        # block count); their contribution is masked to zero in the kernel.
        return (jnp.minimum(b, last_block), 0)

    kernel = _make_partial_kernel(n, chunk_rows, need_mask)

    partial = pl.pallas_call(
        kernel,
        out_shape=jax.ShapeDtypeStruct((g * 8, d), jnp.float32),
        grid_spec=pltpu.PrefetchScalarGridSpec(
            num_scalar_prefetch=0,
            grid=(g, tiles_per_chunk),
            in_specs=[
                pl.BlockSpec((tn, d), in_map),
                pl.BlockSpec((tn, d), in_map),
                pl.BlockSpec((tn, d), in_map),
            ],
            out_specs=pl.BlockSpec((8, d), lambda gi, ti: (gi, 0)),
        ),
        compiler_params=pltpu.CompilerParams(
            dimension_semantics=("parallel", "arbitrary"),
            vmem_limit_bytes=48 * 1024 * 1024,
        ),
    )(src_cdf, tgt_cdf, far_cdf)

    # O(D) epilogue: combine per-core / per-sublane partials, normalize by the
    # true N, hinge with the margin, mean over the descriptor dimension.
    delta = jnp.sum(partial, axis=0) / jnp.float32(n)        # pos_dist - neg_dist
    return jnp.mean(jnp.maximum(delta + jnp.float32(margin), 0.0))


class TripletLoss:
    """Thin wrapper mirroring the PyTorch module interface."""

    def __init__(self, margin=0.2):
        self.margin = margin

    def __call__(self, x):
        src_cdf, tgt_cdf, far_cdf = x
        return triplet_loss(src_cdf, tgt_cdf, far_cdf, margin=self.margin)


if __name__ == "__main__":
    N, D = 512, 128
    key = jax.random.PRNGKey(0)
    k1, k2, k3 = jax.random.split(key, 3)
    src = jax.random.normal(k1, (N, D), dtype=jnp.float32)
    tgt = jax.random.normal(k2, (N, D), dtype=jnp.float32)
    far = jax.random.normal(k3, (N, D), dtype=jnp.float32)

    def ref_loss(s, t, f, margin=0.2):
        pos = jnp.mean(jnp.square(s - t), axis=0)
        neg = jnp.mean(jnp.square(s - f), axis=0)
        return jnp.mean(jnp.maximum(pos - neg + margin, 0.0))

    # 1) Multi-step pipelined reduction (explicit small tile, grid = (1, 8)).
    loss = triplet_loss(src, tgt, far, margin=0.2, tile_rows=64)
    jax.block_until_ready(loss)
    assert jnp.allclose(loss, ref_loss(src, tgt, far), atol=1e-5, rtol=1e-5)

    # 2) Explicit 2-way row split (exercises the "parallel" axis on any chip).
    loss_g2 = triplet_loss(src, tgt, far, margin=0.2, tile_rows=64,
                           num_row_chunks=2)
    jax.block_until_ready(loss_g2)
    assert jnp.allclose(loss_g2, ref_loss(src, tgt, far), atol=1e-5, rtol=1e-5)

    # 3) Ragged N with auto tiling: in-kernel tail mask, no jnp.pad.
    m = 500
    loss_m = triplet_loss(src[:m], tgt[:m], far[:m], margin=0.2)
    jax.block_until_ready(loss_m)
    assert jnp.allclose(loss_m, ref_loss(src[:m], tgt[:m], far[:m]),
                        atol=1e-5, rtol=1e-5)

    # 4) Ragged N + 2-way split with an odd block count (exercises the clamped
    #    fully-out-of-bounds block path).
    loss_m2 = triplet_loss(src[:m], tgt[:m], far[:m], margin=0.2,
                           tile_rows=192, num_row_chunks=2)
    jax.block_until_ready(loss_m2)
    assert jnp.allclose(loss_m2, ref_loss(src[:m], tgt[:m], far[:m]),
                        atol=1e-5, rtol=1e-5)

    # 5) Module-style interface (matches the PyTorch class).
    loss_mod = TripletLoss(margin=0.2)((src, tgt, far))
    jax.block_until_ready(loss_mod)
    assert jnp.allclose(loss_mod, ref_loss(src, tgt, far), atol=1e-5, rtol=1e-5)

    print("KERNEL_OK")
</pallas_src>

<mosaic_0001>
module attributes {stable_mosaic.version = 11 : i64} {
  func.func @kernel(%arg0: i32, %arg1: i32, %arg2: memref<64x128xf32, #tpu.memory_space<vmem>>, %arg3: memref<64x128xf32, #tpu.memory_space<vmem>>, %arg4: memref<64x128xf32, #tpu.memory_space<vmem>>, %arg5: memref<8x128xf32, #tpu.memory_space<vmem>>) attributes {dimension_semantics = [#tpu.dimension_semantics<parallel>, #tpu.dimension_semantics<arbitrary>], iteration_bounds = array<i64: 1, 8>, scalar_prefetch = 0 : i64, scratch_operands = 0 : i64, tpu.core_type = #tpu.core_type<tc>, window_params = [{transform_indices = @transform_0, window_bounds = array<i64: 64, 128>}, {transform_indices = @transform_1, window_bounds = array<i64: 64, 128>}, {transform_indices = @transform_2, window_bounds = array<i64: 64, 128>}, {transform_indices = @transform_3, window_bounds = array<i64: 8, 128>}]} {
    %c0_i32 = arith.constant 0 : i32
    %0 = arith.cmpi eq, %arg1, %c0_i32 : i32
    %1 = arith.extui %0 : i1 to i32
    %c0_i32_0 = arith.constant 0 : i32
    %2 = arith.cmpi ne, %1, %c0_i32_0 : i32
    scf.if %2 {
      %cst_10 = arith.constant 0.000000e+00 : f32
      %24 = vector.broadcast %cst_10 : f32 to vector<8x128xf32>
      %c0_11 = arith.constant 0 : index
      %c0_12 = arith.constant 0 : index
      %25 = vector.load %arg5[%c0_11, %c0_12] : memref<8x128xf32, #tpu.memory_space<vmem>>, vector<8x128xf32>
      tpu.vector_store %arg5[%c0_11, %c0_12], %24 {strides = array<i32>} : memref<8x128xf32, #tpu.memory_space<vmem>>, vector<8x128xf32>,
    } else {
    }
    %cst = arith.constant 0.000000e+00 : f32
    %3 = vector.broadcast %cst : f32 to vector<8x128xf32>
    %c0_i32_1 = arith.constant 0 : i32
    %c64_i32 = arith.constant 64 : i32
    %4 = arith.muli %c0_i32_1, %c64_i32 : i32
    %5 = tpu.assume_multiple %4, 64 : i32
    %6 = arith.index_cast %5 : i32 to index
    %c0 = arith.constant 0 : index
    %7 = vector.load %arg2[%6, %c0] : memref<64x128xf32, #tpu.memory_space<vmem>>, vector<64x128xf32>
    %8 = arith.index_cast %5 : i32 to index
    %c0_2 = arith.constant 0 : index
    %9 = vector.load %arg3[%8, %c0_2] : memref<64x128xf32, #tpu.memory_space<vmem>>, vector<64x128xf32>
    %10 = arith.index_cast %5 : i32 to index
    %c0_3 = arith.constant 0 : index
    %11 = vector.load %arg4[%10, %c0_3] : memref<64x128xf32, #tpu.memory_space<vmem>>, vector<64x128xf32>
    %12 = arith.subf %9, %11 : vector<64x128xf32>
    %13 = arith.addf %9, %11 : vector<64x128xf32>
    %cst_4 = arith.constant 2.000000e+00 : f32
    %14 = vector.broadcast %cst_4 : f32 to vector<64x128xf32>
    %15 = arith.mulf %14, %7 : vector<64x128xf32>
    %16 = arith.subf %13, %15 : vector<64x128xf32>
    %17 = arith.mulf %12, %16 : vector<64x128xf32>
    %18 = vector.shape_cast %17 : vector<64x128xf32> to vector<8x8x128xf32>
    %cst_5 = arith.constant dense<0.000000e+00> : vector<8x128xf32>
    %19 = vector.multi_reduction <add>, %18, %cst_5 [0] : vector<8x8x128xf32> to vector<8x128xf32>
    %20 = arith.addf %3, %19 : vector<8x128xf32>
    %c1_i32 = arith.constant 1 : i32
    %c0_6 = arith.constant 0 : index
    %c0_7 = arith.constant 0 : index
    %21 = vector.load %arg5[%c0_6, %c0_7] : memref<8x128xf32, #tpu.memory_space<vmem>>, vector<8x128xf32>
    %22 = arith.addf %21, %20 : vector<8x128xf32>
    %c0_8 = arith.constant 0 : index
    %c0_9 = arith.constant 0 : index
    %23 = vector.load %arg5[%c0_8, %c0_9] : memref<8x128xf32, #tpu.memory_space<vmem>>, vector<8x128xf32>
    tpu.vector_store %arg5[%c0_8, %c0_9], %22 {strides = array<i32>} : memref<8x128xf32, #tpu.memory_space<vmem>>, vector<8x128xf32>,
    return
  }
  func.func @transform_0(%arg0: i32, %arg1: i32) -> (i32, i32) {
    %c8_i32 = arith.constant 8 : i32
    %0 = arith.muli %arg0, %c8_i32 : i32
    %1 = arith.addi %0, %arg1 : i32
    %c7_i32 = arith.constant 7 : i32
    %2 = arith.minsi %1, %c7_i32 : i32
    %c0_i32 = arith.constant 0 : i32
    %c0_i32_0 = arith.constant 0 : i32
    return %2, %c0_i32 : i32, i32
  }
  func.func @transform_1(%arg0: i32, %arg1: i32) -> (i32, i32) {
    %c8_i32 = arith.constant 8 : i32
    %0 = arith.muli %arg0, %c8_i32 : i32
    %1 = arith.addi %0, %arg1 : i32
    %c7_i32 = arith.constant 7 : i32
    %2 = arith.minsi %1, %c7_i32 : i32
    %c0_i32 = arith.constant 0 : i32
    %c0_i32_0 = arith.constant 0 : i32
    return %2, %c0_i32 : i32, i32
  }
  func.func @transform_2(%arg0: i32, %arg1: i32) -> (i32, i32) {
    %c8_i32 = arith.constant 8 : i32
    %0 = arith.muli %arg0, %c8_i32 : i32
    %1 = arith.addi %0, %arg1 : i32
    %c7_i32 = arith.constant 7 : i32
    %2 = arith.minsi %1, %c7_i32 : i32
    %c0_i32 = arith.constant 0 : i32
    %c0_i32_0 = arith.constant 0 : i32
    return %2, %c0_i32 : i32, i32
  }
  func.func @transform_3(%arg0: i32, %arg1: i32) -> (i32, i32) {
    %c0_i32 = arith.constant 0 : i32
    %c0_i32_0 = arith.constant 0 : i32
    return %arg0, %c0_i32 : i32, i32
  }
}

</mosaic_0001>

<bundles_post_ra>
// kernel: tpu_custom_call.1
= control target key start
LH: loop header
LB: loop body
LE: loop exit
PB: predicated region body
PF: predicated region fallthrough
CT: control target
= control target key end

     0   :  { %8 = vsyncpa [#allocation3], 0  ;;  %s1087_s0 = inlined_call_operand.hbm [shape: f32[512,128], index: 0, kind: input, shape index: {}]   ;;  %s1088_s1 = inlined_call_operand.hbm [shape: f32[512,128], index: 1, kind: input, shape index: {}]   ;;  %s1089_s2 = inlined_call_operand.hbm [shape: f32[512,128], index: 2, kind: input, shape index: {}]   ;;  %s1090_s3 = inlined_call_operand.hbm [shape: f32[8,128], index: 3, kind: output, shape index: {}]  }
   0x1   :  { %10 = vsyncpa [#allocation3 + $0x1], 0 }
   0x2   :  { %11 = vsyncpa [#allocation6], 0 }
   0x3   :  { %13 = vsyncpa [#allocation6 + $0x1], 0 }
   0x4   :  { %14 = vsyncpa [#allocation4], 0  ;;  %s817_s12 = smov 0   ;;  %s819_s13 = smov 0  }
   0x5   :  { %s821_s14 = smov 0   ;;  %s823_s15 = smov 0  }
   0x6   :  { %s825_s16 = smov 0   ;;  %s827_s17 = smov 0  }
   0x7 LB: > { %s846_s18 = sadd.s32 4294967295, %s788_s17   ;;  %s29_s19 = sadd.s32 1, %s784_s16  ;;  %s788_s17 = sphi %s827_s17, %s20_s17   ;;  %s784_s16 = sphi %s825_s16, %s1106_s16   ;;  %s780_s15 = sphi %s823_s15, %s1105_s15   ;;  %s776_s14 = sphi %s821_s14, %s1104_s14   ;;  %s772_s13 = sphi %s819_s13, %s1103_s13   ;;  %s768_s12 = sphi %s817_s12, %s1102_s12  }
   0x8   : > { %p30_p0 = scmp.ge.s32.totalorder %s29_s19, 8  ;;  %p38_p1 = scmp.lt.s32.totalorder %s784_s16, 7 }
   0x9   : > { %s47_s20 = sadd.s32 1, %s776_s14  ;;  %p54_p2 = scmp.ne.s32.totalorder %s776_s14, %s772_s13 }
   0xa   : > { %s1108_s19 = smov (%p30_p0, %s29_s19), 0  ;;  %p55_p4 = scmp.eq.s32.totalorder %s788_s17, 0 }
   0xb   : > { %s39_s21 = scalar_select %p38_p1, %s784_s16, 7 }
   0xc   : > { %p42_p3 = scmp.lt.s32.totalorder %s1108_s19, 7  ;;  %p60_p5 = scmp.ne.s32.totalorder %s772_s13, %s768_s12 }
   0xd   : > { %p61_p6 = scmp.eq.s32.totalorder %s846_s18, 0  ;;  %p56_p7 = por %p55_p4, %p54_p2 }
   0xe   : > { %s43_s22 = scalar_select %p42_p3, %s1108_s19, 7 }
   0xf   : > { %p861_p8 = por %p61_p6, %p60_p5  ;;  %p559_p10 = scmp.lt.s32.totalorder %s788_s17, 8 }
  0x10   : > { %s44_s24 = ssub.s32 %s39_s21, %s43_s22  ;;  %s178_s25 = sand.u32 1, %s776_s14  }
  0x11   : > { %s1094_s23 = scalar_select %p861_p8, 1, 0 }
  0x12   : > { %p45_p9 = scmp.eq.s32.totalorder %s44_s24, 0  ;;  %s867_s26 = sshll.u32 %s39_s21, 10 }
  0x13   : > { %s874_s28 = sshll.u32 %s178_s25, 6  ;;  %p876_p11 = pnand %p559_p10, %p56_p7 }
  0x14   : > { %s870_s27 = scalar_select %p45_p9, %s776_s14, %s47_s20  }
  0x15   : > { %s203_s30 = sand.u32 1, %s788_s17   ;;  %s885_s6 = scalar_lea.hbm %s1088_s1, %s867_s26 }
  0x16   : > { %s207_s7 = scalar_lea.vmem [#allocation5], %s874_s28  ;;  %s891_s9 = scalar_lea.sflag [#allocation6], %s203_s30 }
  0x17   : > { %s218_s8 = sshll.u32 %s207_s7, 4  ;;  %s614_s10 = scalar_lea.hbm %s885_s6, 1024  ;;  %s888_s8 = int_to_ptr.vmem [resolvable:$true] %s218_s8 }
  0x18   : > { %p615_p13 = scmp.ne.s32.totalorder %s885_s6, %s614_s10  ;;  %p897_p0 = pneg %p876_p11 }
  0x19   : > { %s619_s21 = scalar_lea.hbm %s1088_s1, 8192  ;;  %p620_p3 = scmp.lt.u32.totalorder %s885_s6, %s1088_s1 }
  0x1a   : > { %p617_p1 = pnand %p897_p0, %p615_p13  ;;  %p621_p4 = scmp.lt.u32.totalorder %s619_s21, %s614_s10 }
  0x1b   : > { %p623_p6 = scmp.lt.u32.totalorder %s614_s10, %s885_s6 }
  0x1c   : > { %p618_p2 = pneg %p617_p1  ;;  %p622_p5 = por %p621_p4, %p620_p3 }
  0x1e   : > { %p624_p7 = por %p623_p6, %p622_p5 }
  0x20   : > { %p625_p9 = pnand %p624_p7, %p618_p2 }
  0x22   : > { %628 = shalt.err (!%p625_p9)
}
  0x23   : > { %s629_s30 = scalar_lea.vmem %s888_s8, 1024  ;;  %s790_s4 = smov [#allocation5]  }
  0x24   : > { %p630_p10 = scmp.ne.s32.totalorder %s888_s8, %s629_s30  ;;  %s634_s5 = sshll.u32 %s790_s4, 4  ;;  %s635_s5 = int_to_ptr.vmem [resolvable:$false] %s634_s5 }
  0x25   : > { %s636_s7 = scalar_lea.vmem %s635_s5, 2048  ;;  %p637_p12 = scmp.lt.s32.totalorder %s888_s8, %s635_s5 }
  0x26   : > { %p632_p13 = pnand %p630_p10, %p897_p0  ;;  %p638_p8 = scmp.lt.s32.totalorder %s636_s7, %s629_s30 }
  0x28   : > { %p633_p1 = pneg %p632_p13  ;;  %p639_p3 = por %p638_p8, %p637_p12 }
  0x2a   : > { %p640_p4 = pnand %p639_p3, %p633_p1 }
  0x2c   : > { %643 = shalt.err (!%p640_p4)
}
  0x2d   : > { %s1092_s10 = smov 128   ;;  %s792_s12 = smov 8  }
  0x2e   : > { %555 = dma.hbm_to_vmem [thread:$0]  (!%p876_p11), %s885_s6, 1024, %s888_s8, %s891_s9, %s1092_s10, %s1092_s10, %s792_s12  }
  0x2f   : > { %p251_p8 = scmp.lt.s32.totalorder %s788_s17, 9  ;;  %p1097_p12 = scmp.ge.s32.totalorder %s788_s17, 1 }
  0x30   : > { %s935_s24 = scalar_lea.hbm %s1087_s0, %s867_s26  ;;  %s182_s30 = scalar_lea.vmem [#allocation2], %s874_s28 }
  0x31   : > { %p927_p2 = pnand %p1097_p12, %p251_p8  ;;  %s193_s4 = sshll.u32 %s182_s30, 4  ;;  %s938_s4 = int_to_ptr.vmem [resolvable:$true] %s193_s4 }
  0x32   : > { %s942_s6 = scalar_lea.sflag [#allocation3], %s178_s25  ;;  %s644_s8 = scalar_lea.hbm %s935_s24, 1024 }
  0x33   : > { %s1098_s20 = scalar_select %p927_p2, 1, 0 }
  0x34   : > { %p645_p5 = scmp.ne.s32.totalorder %s935_s24, %s644_s8  ;;  %s649_s21 = scalar_lea.hbm %s1087_s0, 8192 }
  0x35   : > { %p650_p9 = scmp.lt.u32.totalorder %s935_s24, %s1087_s0  ;;  %p651_p10 = scmp.lt.u32.totalorder %s649_s21, %s644_s8 }
  0x36   : > { %p647_p6 = pnand %p645_p5, %p897_p0  ;;  %p653_p1 = scmp.lt.u32.totalorder %s644_s8, %s935_s24 }
  0x37   : > { %p652_p13 = por %p651_p10, %p650_p9 }
  0x38   : > { %p648_p7 = pneg %p647_p6 }
  0x39   : > { %p654_p3 = por %p653_p1, %p652_p13 }
  0x3b   : > { %p655_p4 = pnand %p654_p3, %p648_p7 }
  0x3d   : > { %658 = shalt.err (!%p655_p4)
}
  0x3e   : > { %s659_s25 = scalar_lea.vmem %s938_s4, 1024  ;;  %s793_s30 = smov [#allocation2]  }
  0x3f   : > { %p660_p8 = scmp.ne.s32.totalorder %s938_s4, %s659_s25  ;;  %s664_s5 = sshll.u32 %s793_s30, 4  ;;  %s665_s5 = int_to_ptr.vmem [resolvable:$false] %s664_s5 }
  0x40   : > { %s666_s10 = scalar_lea.vmem %s665_s5, 2048  ;;  %p667_p6 = scmp.lt.s32.totalorder %s938_s4, %s665_s5 }
  0x41   : > { %p662_p12 = pnand %p660_p8, %p897_p0  ;;  %p668_p2 = scmp.lt.s32.totalorder %s666_s10, %s659_s25 }
  0x43   : > { %p663_p5 = pneg %p662_p12  ;;  %p669_p9 = por %p668_p2, %p667_p6 }
  0x45   : > { %p670_p10 = pnand %p669_p9, %p663_p5 }
  0x47   : > { %673 = shalt.err (!%p670_p10)
}
  0x48   : > { %s1099_s8 = smov 128   ;;  %s973_s22 = scalar_lea.hbm %s1089_s2, %s867_s26 }
  0x49   : > { %552 = dma.hbm_to_vmem [thread:$0]  (!%p876_p11), %s935_s24, 1024, %s938_s4, %s942_s6, %s1099_s8, %s1099_s8, %s792_s12  }
  0x4a   : > { %s232_s25 = scalar_lea.vmem [#allocation7], %s874_s28  ;;  %s674_s5 = scalar_lea.hbm %s973_s22, 1024 }
  0x4b   : > { %s243_s30 = sshll.u32 %s232_s25, 4  ;;  %p675_p2 = scmp.ne.s32.totalorder %s973_s22, %s674_s5  ;;  %s976_s30 = int_to_ptr.vmem [resolvable:$true] %s243_s30 }
  0x4c   : > { %s679_s4 = scalar_lea.hbm %s1089_s2, 8192  ;;  %p680_p1 = scmp.lt.u32.totalorder %s973_s22, %s1089_s2 }
  0x4d   : > { %p677_p7 = pnand %p675_p2, %p897_p0  ;;  %p681_p3 = scmp.lt.u32.totalorder %s679_s4, %s674_s5 }
  0x4e   : > { %p683_p8 = scmp.lt.u32.totalorder %s674_s5, %s973_s22 }
  0x4f   : > { %p678_p13 = pneg %p677_p7  ;;  %p682_p4 = por %p681_p3, %p680_p1 }
  0x51   : > { %p684_p12 = por %p683_p8, %p682_p4 }
  0x53   : > { %p685_p5 = pnand %p684_p12, %p678_p13 }
  0x55   : > { %688 = shalt.err (!%p685_p5)
}
  0x56   : > { %s689_s28 = scalar_lea.vmem %s976_s30, 1024  ;;  %s794_s7 = smov [#allocation7]  }
  0x57   : > { %p690_p6 = scmp.ne.s32.totalorder %s976_s30, %s689_s28  ;;  %s694_s21 = sshll.u32 %s794_s7, 4  ;;  %s695_s21 = int_to_ptr.vmem [resolvable:$false] %s694_s21 }
  0x58   : > { %s696_s25 = scalar_lea.vmem %s695_s21, 2048  ;;  %p697_p2 = scmp.lt.s32.totalorder %s976_s30, %s695_s21 }
  0x59   : > { %p692_p9 = pnand %p690_p6, %p897_p0  ;;  %p698_p7 = scmp.lt.s32.totalorder %s696_s25, %s689_s28 }
  0x5b   : > { %p693_p10 = pneg %p692_p9  ;;  %p699_p1 = por %p698_p7, %p697_p2 }
  0x5d   : > { %p700_p3 = pnand %p699_p1, %p693_p10 }
  0x5f   : > { %703 = shalt.err (!%p700_p3)
}
  0x60   : > { %558 = dma.hbm_to_vmem [thread:$0]  (!%p876_p11), %s973_s22, 1024, %s976_s30, %s891_s9, %s1099_s8, %s1099_s8, %s792_s12  }
  0x61   : > { %p1100_p0 = scmp.ne.s32.totalorder %s1098_s20, 0 }
  0x62   : > { %s257_s11 = sand.u32 (!%p1100_p0), 1, %s772_s13   ;;  %p1101_p13 = scmp.ne.s32.totalorder (!%p1100_p0), %s1094_s23, 0 }
  0x63   : > { %255 = sbr.rel (%p1100_p0) target bundleno = 161 (0xa1), region = 32  ;;  %s528_s5 = sshll.u32 (!%p1100_p0), %s257_s11, 6 }
  0x64   : > { %s258_s10 = scalar_lea.sflag (!%p1100_p0), [#allocation3], %s257_s11  ;;  %s1006_s24 = scalar_lea.vmem (!%p1100_p0), [#allocation2], %s528_s5 }
  0x6a   : > { %755 = dma.done.wait (%p1101_p13), %s258_s10, 1024  }
  0x6b   : > { %757 = vsyncadd (%p1101_p13), %s258_s10, 4294966272  ;;  %s266_s29 = sand.u32 1, %s846_s18   ;;  %s1013_s9 = scalar_lea.vmem [#allocation5], %s528_s5 }
  0x6c   : > { %s267_s4 = scalar_lea.sflag [#allocation6], %s266_s29 }
  0x6d   : > { %759 = dma.done.wait (%p1101_p13), %s267_s4, 2048  }
  0x6e   : > { %761 = vsyncadd (%p1101_p13), %s267_s4, 4294965248  ;;  %s1019_s12 = scalar_lea.vmem [#allocation7], %s528_s5  ;;  %p531_p11 = scmp.ne.s32.totalorder %s780_s15, 0 }
  0x6f   : > { %v795_v0 = vmov (!%p531_p11), 0.0  }
  0x70   : > { %325 = sbr.rel (%p531_p11) target bundleno = 119 (0x77), region = 48  ;;  %326 = vst [vmem:[#allocation8] sm:$0xff] (!%p531_p11), %v795_v0 }
  0x77 PF: > { %v327_v1 = vld [vmem:[%s1006_s24] sm:$0xff]  ;;  %v328_v2 = vld [vmem:[%s1006_s24 + $0x8] sm:$0xff]  ;;  %v329_v3 = vld [vmem:[%s1006_s24 + $0x10] sm:$0xff]  ;;  %s796_s15 = smov [#allocation8]   ;;  %p560_p4 = scmp.eq.s32.totalorder %s846_s18, 7 }
  0x78   : > { %v330_v4 = vld [vmem:[%s1006_s24 + $0x18] sm:$0xff]  ;;  %v331_v5 = vld [vmem:[%s1006_s24 + $0x20] sm:$0xff]  ;;  %v336_v7 = vld [vmem:[%s1013_s9 + $0x8] sm:$0xff]  ;;  %v367_v15 = vmul.f32 2.0, %v327_v1  ;;  %v368_v16 = vmul.f32 2.0, %v328_v2  ;;  %v369_v22 = vmul.f32 2.0, %v329_v3 }
  0x79   : > { %v335_v6 = vld [vmem:[%s1013_s9] sm:$0xff]  ;;  %v332_v8 = vld [vmem:[%s1006_s24 + $0x28] sm:$0xff]  ;;  %v337_v9 = vld [vmem:[%s1013_s9 + $0x10] sm:$0xff]  ;;  %v370_v23 = vmul.f32 2.0, %v330_v4  ;;  %v371_v26 = vmul.f32 2.0, %v331_v5  ;;  %s411_s23 = sshll.u32 %s796_s15, 4  ;;  %s412_s23 = int_to_ptr.vmem [resolvable:$true] %s411_s23 }
  0x7a   : > { %v338_v10 = vld [vmem:[%s1013_s9 + $0x18] sm:$0xff]  ;;  %v339_v11 = vld [vmem:[%s1013_s9 + $0x20] sm:$0xff]  ;;  %v340_v12 = vld [vmem:[%s1013_s9 + $0x28] sm:$0xff]  ;;  %v372_v37 = vmul.f32 2.0, %v332_v8  ;;  %s704_s20 = scalar_lea.vmem %s412_s23, 128  ;;  %p711_p6 = scmp.lt.s32.totalorder %s412_s23, %s412_s23 }
  0x7b   : > { %v343_v13 = vld [vmem:[%s1019_s12] sm:$0xff]  ;;  %v344_v14 = vld [vmem:[%s1019_s12 + $0x8] sm:$0xff]  ;;  %v345_v17 = vld [vmem:[%s1019_s12 + $0x10] sm:$0xff]  ;;  %p705_p8 = scmp.ne.s32.totalorder %s412_s23, %s704_s20  ;;  %p712_p9 = scmp.lt.s32.totalorder %s704_s20, %s704_s20 }
  0x7c   : > { %v346_v18 = vld [vmem:[%s1019_s12 + $0x18] sm:$0xff]  ;;  %v347_v19 = vld [vmem:[%s1019_s12 + $0x20] sm:$0xff]  ;;  %v359_v20 = vadd.f32 %v343_v13, %v335_v6  ;;  %v360_v21 = vadd.f32 %v344_v14, %v336_v7  ;;  %v348_v24 = vld [vmem:[%s1019_s12 + $0x28] sm:$0xff]  ;;  %v361_v25 = vadd.f32 %v345_v17, %v337_v9  ;;  %v351_v30 = vsub.f32 %v335_v6, %v343_v13 }
  0x7d   : > { %v333_v27 = vld [vmem:[%s1006_s24 + $0x30] sm:$0xff]  ;;  %v352_v31 = vsub.f32 %v336_v7, %v344_v14  ;;  %v353_v32 = vsub.f32 %v337_v9, %v345_v17  ;;  %v362_v33 = vadd.f32 %v346_v18, %v338_v10  ;;  %v354_v34 = vsub.f32 %v338_v10, %v346_v18  ;;  %v334_v38 = vld [vmem:[%s1006_s24 + $0x38] sm:$0xff]  ;;  %v399_v7 = vld [vmem:[#allocation8] sm:$0xff]  ;;  %p706_p12 = pnand %p705_p8, %p560_p4  ;;  %p713_p10 = por %p712_p9, %p711_p6 }
  0x7e   : > { %v341_v28 = vld [vmem:[%s1013_s9 + $0x30] sm:$0xff]  ;;  %v363_v35 = vadd.f32 %v347_v19, %v339_v11  ;;  %v364_v36 = vadd.f32 %v348_v24, %v340_v12  ;;  %v375_v39 = vsub.f32 %v359_v20, %v367_v15  ;;  %v376_v40 = vsub.f32 %v360_v21, %v368_v16  ;;  %v342_v43 = vld [vmem:[%s1013_s9 + $0x38] sm:$0xff] }
  0x7f   : > { %v349_v29 = vld [vmem:[%s1019_s12 + $0x30] sm:$0xff]  ;;  %v377_v41 = vsub.f32 %v361_v25, %v369_v22  ;;  %v378_v42 = vsub.f32 %v362_v33, %v370_v23  ;;  %v350_v44 = vld [vmem:[%s1019_s12 + $0x38] sm:$0xff]  ;;  %v355_v45 = vsub.f32 %v339_v11, %v347_v19  ;;  %v373_v47 = vmul.f32 2.0, %v333_v27  ;;  %p707_p5 = pneg %p706_p12 }
  0x80   : > { %v365_v46 = vadd.f32 %v349_v29, %v341_v28  ;;  %v379_v48 = vsub.f32 %v363_v35, %v371_v26  ;;  %v383_v49 = vmul.f32 %v375_v39, %v351_v30  ;;  %v384_v50 = vmul.f32 %v376_v40, %v352_v31 }
  0x81   : > { %v385_v51 = vmul.f32 %v377_v41, %v353_v32  ;;  %v356_v52 = vsub.f32 %v340_v12, %v348_v24  ;;  %v374_v53 = vmul.f32 2.0, %v334_v38  ;;  %v366_v54 = vadd.f32 %v350_v44, %v342_v43  ;;  %p714_p2 = pnand %p713_p10, %p707_p5 }
  0x82   : > { %v380_v55 = vsub.f32 %v364_v36, %v372_v37  ;;  %v386_v56 = vmul.f32 %v378_v42, %v354_v34  ;;  %v391_v57 = vadd.f32 %v384_v50, %v383_v49  ;;  %v357_v58 = vsub.f32 %v341_v28, %v349_v29 }
  0x83   : > { %v381_v59 = vsub.f32 %v365_v46, %v373_v47  ;;  %v387_v60 = vmul.f32 %v379_v48, %v355_v45  ;;  %v358_v62 = vsub.f32 %v342_v43, %v350_v44  ;;  %v382_v63 = vsub.f32 %v366_v54, %v374_v53 }
  0x84   : > { %v392_v61 = vadd.f32 %v391_v57, %v385_v51  ;;  %v388_v0 = vmul.f32 %v380_v55, %v356_v52 }
  0x85   : > { %v389_v2 = vmul.f32 %v381_v59, %v357_v58  ;;  %v390_v4 = vmul.f32 %v382_v63, %v358_v62 }
  0x86   : > { %v393_v1 = vadd.f32 %v392_v61, %v386_v56 }
  0x88   : > { %v394_v3 = vadd.f32 %v393_v1, %v387_v60 }
  0x8a   : > { %v395_v5 = vadd.f32 %v394_v3, %v388_v0 }
  0x8c   : > { %v396_v6 = vadd.f32 %v395_v5, %v389_v2 }
  0x8e   : > { %v397_v8 = vadd.f32 %v396_v6, %v390_v4 }
  0x90   : > { %v400_v9 = vadd.f32 %v399_v7, %v397_v8 }
  0x92   : > { %401 = vst [vmem:[#allocation8] sm:$0xff] %v400_v9 }
  0x93   : > { %717 = shalt.err (!%p714_p2)
}
  0x94   : > { %s718_s30 = scalar_lea.hbm %s1090_s3, 128 }
  0x95   : > { %p719_p7 = scmp.ne.s32.totalorder %s1090_s3, %s718_s30  ;;  %p724_p0 = scmp.lt.u32.totalorder %s718_s30, %s1090_s3 }
  0x97   : > { %p720_p1 = pnand %p719_p7, %p560_p4 }
  0x99   : > { %p721_p3 = pneg %p720_p1 }
  0x9b   : > { %p726_p13 = pnand %p724_p0, %p721_p3 }
  0x9d   : > { %729 = shalt.err (!%p726_p13)
}
  0x9e   : > { %546 = dma.vmem_to_hbm [thread:$0]  (%p560_p4), %s412_s23, 128, %s1090_s3, [#allocation4]  }
  0x9f   : > { %763 = dma.done.wait (%p560_p4), [#allocation4], 128  }
  0xa0   : > { %765 = vsyncadd (%p560_p4), [#allocation4], 4294967168 }
  0xa1 PF: > { %s20_s17 = sadd.s32 1, %s788_s17   ;;  %s1102_s12 = smov %s772_s13 }
  0xa2   : > { %p17_p11 = scmp.ge.s32.totalorder %s20_s17, 10   ;;  %s1103_s13 = smov %s776_s14 }
  0xa3   : > { %s1104_s14 = smov %s870_s27  ;;  %s1105_s15 = smov %s784_s16 }
  0xa4   : > { %s1106_s16 = smov %s1108_s19  ;;  %19 = sbr.rel (!%p17_p11) target bundleno = 7 (0x7), region = 98 }
  0xab   :  { %424 = vsyncpa [#allocation3], 1 }
  0xac   :  { %426 = vsyncpa [#allocation3 + $0x1], 1 }
  0xad   :  { %427 = vsyncpa [#allocation6], 1 }
  0xae   :  { %429 = vsyncpa [#allocation6 + $0x1], 1 }
  0xaf   :  { %430 = vsyncpa [#allocation4], 1 }
  0xb0   :  { %432 = vsyncpa [#allocation4 + $0x1], 1 }

</bundles_post_ra>
